<compile_context>
chip_gen: v6e
topology: v6e:2x2x1
jax: 0.10.0
libtpu: 0.0.40
codegen_flags: <defaults>
</compile_context>

<pallas_src>
import jax
import jax.numpy as jnp
from jax import lax
from jax.experimental import pallas as pl
from jax.experimental.pallas import tpu as pltpu

# --- packed-slab layout (static) -------------------------------------------------
_LANES = 128
_IN_FEATURES = 13
_K_PAD = 16            # features padded 13 -> 16 (sublane-aligned K for layer 1)
_OUT_FEATURES = 2
_W1_ROWS = (0, 16)     # (16, 128): w1 in rows 0:13, cols 0:64; rest zero
_W2_ROWS = (16, 144)   # (128,128): w2 in slab rows 16:80, cols 0:32; rest zero
_W3T_ROWS = (144, 152) # (8, 128):  w3^T in rows 0:2, cols 0:32; rest zero
_W_SLAB_ROWS = 160     # padded to a multiple of 16 (bf16 sublane pack)
_B_SLAB_ROWS = 16      # row 0: b1 (cols 0:64); row 1: b2 (cols 0:32);
                       # rows 8:10, lane 0: b3 as a column (for the transposed output)
_BATCH_ALIGN = 128     # batch tile multiple (lane-dense transposed output)
_MAX_TILE = 8192       # keep per-tile VMEM a few MiB on every generation


def mlp_kernel(x_ref, w_ref, b_ref, o_ref):
    # One batch tile per grid step; weight/bias slabs are resident (constant index_map).
    x = x_ref[...].astype(jnp.bfloat16)                 # (TB,16) f32 -> bf16 on the VPU
    w1 = w_ref[_W1_ROWS[0]:_W1_ROWS[1], :]              # (16, 128) bf16
    w2 = w_ref[_W2_ROWS[0]:_W2_ROWS[1], :]              # (128,128) bf16
    w3t = w_ref[_W3T_ROWS[0]:_W3T_ROWS[1], :]           # (8,  128) bf16  (w3 transposed)
    b1 = b_ref[0:1, :]                                   # (1, 128) f32
    b2 = b_ref[1:2, :]                                   # (1, 128) f32
    b3c = b_ref[8:16, 0:1]                               # (8, 1)   f32 column

    # Layer 1: (TB,16)@(16,128); padded lanes 64:128 stay exactly 0 after bias+ReLU.
    h1 = jnp.dot(x, w1, preferred_element_type=jnp.float32) + b1
    h1 = jnp.maximum(h1, 0.0).astype(jnp.bfloat16)       # (TB, 128)
    # Layer 2: zero-padded rows/cols of w2 contribute exactly 0.
    h2 = jnp.dot(h1, w2, preferred_element_type=jnp.float32) + b2
    h2 = jnp.maximum(h2, 0.0).astype(jnp.bfloat16)       # (TB, 128)
    # Layer 3 transposed (A @ B^T, flash-attention style): (8,128)x(TB,128) -> (8,TB).
    # Logits land in rows 0:2; batch is the lane axis -> tiny, lane-dense writeback.
    out_t = lax.dot_general(w3t, h2, dimension_numbers=(((1,), (1,)), ((), ())),
                            preferred_element_type=jnp.float32)
    o_ref[...] = out_t + b3c


def pack_params(params):
    """Pack torch-style (pre-transposed, i.e. (in,out)) Linear params into two slabs.

    Call this ONCE; pass the returned slabs to heart_disease_nn (hoisted out of the
    per-call path so the bf16 cast / scatter is not re-materialized every forward).
    """
    w1, b1, w2, b2, w3, b3 = params   # (13,64),(1,64),(64,32),(1,32),(32,2),(1,2)
    w_slab = jnp.zeros((_W_SLAB_ROWS, _LANES), jnp.float32)
    w_slab = w_slab.at[0:13, 0:64].set(w1)
    w_slab = w_slab.at[16:80, 0:32].set(w2)
    w_slab = w_slab.at[144:146, 0:32].set(w3.T)          # transposed last layer
    w_slab = w_slab.astype(jnp.bfloat16)                  # MXU operands in bf16

    b_slab = jnp.zeros((_B_SLAB_ROWS, _LANES), jnp.float32)   # biases stay f32
    b_slab = b_slab.at[0, 0:64].set(b1[0])
    b_slab = b_slab.at[1, 0:32].set(b2[0])
    b_slab = b_slab.at[8:10, 0].set(b3[0])                 # b3 as an (8,1) column
    return w_slab, b_slab


def _round_up(n, m):
    return (n + m - 1) // m * m


def heart_disease_nn(x, w_slab, b_slab, tile_b=2048):
    """Forward pass. x: (B, 13) float32. Returns (B, 2) float32 logits."""
    B = x.shape[0]
    tb = max(_BATCH_ALIGN, min(int(tile_b), _MAX_TILE))
    tb = _round_up(tb, _BATCH_ALIGN)
    tb = min(tb, _round_up(B, _BATCH_ALIGN))      # never bigger than the padded batch
    Bp = _round_up(B, tb)                         # every grid step is a full tile

    # Single wrapper-side pass over x: pad batch -> Bp and features 13 -> 16.
    xp = jnp.pad(x, ((0, Bp - B), (0, _K_PAD - _IN_FEATURES)))

    out_t = pl.pallas_call(
        mlp_kernel,
        out_shape=jax.ShapeDtypeStruct((8, Bp), jnp.float32),   # 32 B per batch row
        grid=(Bp // tb,),
        in_specs=[
            pl.BlockSpec((tb, _K_PAD), lambda i: (i, 0)),               # batch tile (f32)
            pl.BlockSpec((_W_SLAB_ROWS, _LANES), lambda i: (0, 0)),     # resident weights
            pl.BlockSpec((_B_SLAB_ROWS, _LANES), lambda i: (0, 0)),     # resident biases
        ],
        out_specs=pl.BlockSpec((8, tb), lambda i: (0, i)),              # lane-dense batch
        compiler_params=pltpu.CompilerParams(
            dimension_semantics=("parallel",)),   # shard batch tiles across TCs on v7x
    )(xp, w_slab, b_slab)

    return out_t[:_OUT_FEATURES, :B].T            # (B, 2)


# jit the wrapper so pad -> kernel -> slice/transpose is one compiled program.
forward = jax.jit(heart_disease_nn, static_argnames=("tile_b",))


def init_params(key):
    # Deterministic synthetic init (nn.Linear 13->64, 64->32, 32->2, stored as (in,out)).
    k1, k2, k3, k4, k5, k6 = jax.random.split(key, 6)
    w1 = jax.random.normal(k1, (13, 64), jnp.float32) * 0.1
    b1 = jax.random.normal(k2, (1, 64), jnp.float32) * 0.1
    w2 = jax.random.normal(k3, (64, 32), jnp.float32) * 0.1
    b2 = jax.random.normal(k4, (1, 32), jnp.float32) * 0.1
    w3 = jax.random.normal(k5, (32, 2), jnp.float32) * 0.1
    b3 = jax.random.normal(k6, (1, 2), jnp.float32) * 0.1
    return (w1, b1, w2, b2, w3, b3)


def reference_forward(x, params, bf16_operands=True):
    w1, b1, w2, b2, w3, b3 = params
    if bf16_operands:
        def dot(a, b):
            return jnp.dot(a.astype(jnp.bfloat16), b.astype(jnp.bfloat16),
                           preferred_element_type=jnp.float32)
    else:
        dot = jnp.dot
    h1 = jnp.maximum(dot(x, w1) + b1, 0.0)
    h2 = jnp.maximum(dot(h1, w2) + b2, 0.0)
    return dot(h2, w3) + b3


if __name__ == "__main__":
    key = jax.random.PRNGKey(0)
    kx, kp = jax.random.split(key)
    params = init_params(kp)
    w_slab, b_slab = pack_params(params)        # packed ONCE, outside the per-call path

    batch = 303  # heart-disease-dataset-sized batch; deliberately not a tile multiple
    x = jax.random.normal(kx, (batch, 13), jnp.float32)

    ref_bf16 = reference_forward(x, params, bf16_operands=True)
    ref_f32 = reference_forward(x, params, bf16_operands=False)

    # Exercise the multi-step grid path (tile_b=128 -> 3 tiles + remainder padding)
    # and the default big-tile path (tile_b=2048 -> single 384-row tile).
    for tile_b in (128, 2048):
        out = jax.block_until_ready(forward(x, w_slab, b_slab, tile_b=tile_b))
        assert out.shape == (batch, _OUT_FEATURES), out.shape
        assert jnp.allclose(out, ref_bf16, atol=1e-3, rtol=1e-3), "mismatch vs bf16 reference"
        assert jnp.allclose(out, ref_f32, atol=2e-2, rtol=2e-2), "mismatch vs f32 reference"

    print("KERNEL_OK")
</pallas_src>

<mosaic_0001>
module attributes {stable_mosaic.version = 11 : i64} {
  func.func @mlp_kernel(%arg0: i32, %arg1: memref<128x16xf32, #tpu.memory_space<vmem>>, %arg2: memref<160x128xbf16, #tpu.memory_space<vmem>>, %arg3: memref<16x128xf32, #tpu.memory_space<vmem>>, %arg4: memref<8x128xf32, #tpu.memory_space<vmem>>) attributes {dimension_semantics = [#tpu.dimension_semantics<parallel>], iteration_bounds = array<i64: 3>, scalar_prefetch = 0 : i64, scratch_operands = 0 : i64, tpu.core_type = #tpu.core_type<tc>, window_params = [{transform_indices = @transform_0, window_bounds = array<i64: 128, 16>}, {pipeline_mode = #tpu.pipeline_mode<synchronous>, transform_indices = @transform_1, window_bounds = array<i64: 160, 128>}, {pipeline_mode = #tpu.pipeline_mode<synchronous>, transform_indices = @transform_2, window_bounds = array<i64: 16, 128>}, {transform_indices = @transform_3, window_bounds = array<i64: 8, 128>}]} {
    %c0 = arith.constant 0 : index
    %c0_0 = arith.constant 0 : index
    %0 = vector.load %arg1[%c0, %c0_0] : memref<128x16xf32, #tpu.memory_space<vmem>>, vector<128x16xf32>
    %1 = arith.truncf %0 : vector<128x16xf32> to vector<128x16xbf16>
    %c0_1 = arith.constant 0 : index
    %c0_2 = arith.constant 0 : index
    %2 = vector.load %arg2[%c0_1, %c0_2] : memref<160x128xbf16, #tpu.memory_space<vmem>>, vector<16x128xbf16>
    %c16 = arith.constant 16 : index
    %c0_3 = arith.constant 0 : index
    %3 = vector.load %arg2[%c16, %c0_3] : memref<160x128xbf16, #tpu.memory_space<vmem>>, vector<128x128xbf16>
    %c144 = arith.constant 144 : index
    %c0_4 = arith.constant 0 : index
    %4 = vector.load %arg2[%c144, %c0_4] : memref<160x128xbf16, #tpu.memory_space<vmem>>, vector<8x128xbf16>
    %c0_5 = arith.constant 0 : index
    %c0_6 = arith.constant 0 : index
    %5 = vector.load %arg3[%c0_5, %c0_6] : memref<16x128xf32, #tpu.memory_space<vmem>>, vector<1x128xf32>
    %c1 = arith.constant 1 : index
    %c0_7 = arith.constant 0 : index
    %6 = vector.load %arg3[%c1, %c0_7] : memref<16x128xf32, #tpu.memory_space<vmem>>, vector<1x128xf32>
    %c8 = arith.constant 8 : index
    %c0_8 = arith.constant 0 : index
    %7 = vector.load %arg3[%c8, %c0_8] : memref<16x128xf32, #tpu.memory_space<vmem>>, vector<8x1xf32>
    %cst = arith.constant dense<0.000000e+00> : vector<128x128xf32>
    %8 = tpu.matmul %1, %2, %cst {dimension_numbers = #tpu.dot_dimension_numbers<[1], [0], [0], [1], [0, 0, 1, 1], [], []>} : vector<128x16xbf16>, vector<16x128xbf16>, vector<128x128xf32> -> vector<128x128xf32>
    %9 = vector.broadcast %5 : vector<1x128xf32> to vector<128x128xf32>
    %10 = arith.addf %8, %9 : vector<128x128xf32>
    %cst_9 = arith.constant 0.000000e+00 : f32
    %11 = vector.broadcast %cst_9 : f32 to vector<128x128xf32>
    %12 = arith.maximumf %10, %11 : vector<128x128xf32>
    %13 = arith.truncf %12 : vector<128x128xf32> to vector<128x128xbf16>
    %cst_10 = arith.constant dense<0.000000e+00> : vector<128x128xf32>
    %14 = tpu.matmul %13, %3, %cst_10 {dimension_numbers = #tpu.dot_dimension_numbers<[1], [0], [0], [1], [0, 0, 1, 1], [], []>} : vector<128x128xbf16>, vector<128x128xbf16>, vector<128x128xf32> -> vector<128x128xf32>
    %15 = vector.broadcast %6 : vector<1x128xf32> to vector<128x128xf32>
    %16 = arith.addf %14, %15 : vector<128x128xf32>
    %cst_11 = arith.constant 0.000000e+00 : f32
    %17 = vector.broadcast %cst_11 : f32 to vector<128x128xf32>
    %18 = arith.maximumf %16, %17 : vector<128x128xf32>
    %19 = arith.truncf %18 : vector<128x128xf32> to vector<128x128xbf16>
    %cst_12 = arith.constant dense<0.000000e+00> : vector<8x128xf32>
    %20 = tpu.matmul %4, %19, %cst_12 {dimension_numbers = #tpu.dot_dimension_numbers<[1], [1], [0], [0], [0, 0, 1, 0], [], []>} : vector<8x128xbf16>, vector<128x128xbf16>, vector<8x128xf32> -> vector<8x128xf32>
    %21 = vector.broadcast %7 : vector<8x1xf32> to vector<8x128xf32>
    %22 = arith.addf %20, %21 : vector<8x128xf32>
    %c0_13 = arith.constant 0 : index
    %c0_14 = arith.constant 0 : index
    %23 = vector.load %arg4[%c0_13, %c0_14] : memref<8x128xf32, #tpu.memory_space<vmem>>, vector<8x128xf32>
    tpu.vector_store %arg4[%c0_13, %c0_14], %22 {strides = array<i32>} : memref<8x128xf32, #tpu.memory_space<vmem>>, vector<8x128xf32>,
    return
  }
  func.func @transform_0(%arg0: i32) -> (i32, i32) {
    %c0_i32 = arith.constant 0 : i32
    %c0_i32_0 = arith.constant 0 : i32
    return %arg0, %c0_i32 : i32, i32
  }
  func.func @transform_1(%arg0: i32) -> (i32, i32) {
    %c0_i32 = arith.constant 0 : i32
    %c0_i32_0 = arith.constant 0 : i32
    %c0_i32_1 = arith.constant 0 : i32
    return %c0_i32, %c0_i32_0 : i32, i32
  }
  func.func @transform_2(%arg0: i32) -> (i32, i32) {
    %c0_i32 = arith.constant 0 : i32
    %c0_i32_0 = arith.constant 0 : i32
    %c0_i32_1 = arith.constant 0 : i32
    return %c0_i32, %c0_i32_0 : i32, i32
  }
  func.func @transform_3(%arg0: i32) -> (i32, i32) {
    %c0_i32 = arith.constant 0 : i32
    %c0_i32_0 = arith.constant 0 : i32
    return %c0_i32, %arg0 : i32, i32
  }
}

</mosaic_0001>

<bundles_post_ra>
// kernel: heart_disease_nn.1
= control target key start
LH: loop header
LB: loop body
LE: loop exit
PB: predicated region body
PF: predicated region fallthrough
CT: control target
= control target key end

     0   :  { %s831_s12 = smov 0   ;;  %s927_s0 = inlined_call_operand.vmem [shape: f32[384,16], index: 0, kind: input, shape index: {}]   ;;  %s928_s1 = inlined_call_operand.vmem [shape: bf16[160,128], index: 1, kind: input, shape index: {}]   ;;  %s929_s2 = inlined_call_operand.vmem [shape: f32[16,128], index: 2, kind: input, shape index: {}]   ;;  %s930_s3 = inlined_call_operand.vmem [shape: f32[8,384], index: 3, kind: output, shape index: {}]  }
   0x1 LB: > { %s837_s13 = sadd.s32 4294967295, %s806_s12   ;;  %p650_p0 = scmp.ge.s32.totalorder %s806_s12, 1  ;;  %s806_s12 = sphi %s831_s12, %s13_s12  }
   0x2   : > { %p138_p1 = scmp.lt.s32.totalorder %s806_s12, 4 }
   0x4   : > { %p139_p2 = pnand %p650_p0, %p138_p1 }
   0x5   : > { %s651_s16 = sshll.u32 (!%p139_p2), %s837_s13, 4  ;;  %p167_p4 = scmp.lt.s32.totalorder (!%p139_p2), %s837_s13, 2 }
   0x6   : > { %142 = sbr.rel (%p139_p2) target bundleno = 713 (0x2c9), region = 32  ;;  %p162_p3 = scmp.lt.s32.totalorder (!%p139_p2), %s651_s16, 47 }
   0xb   : > { %v791_v0 = vld [vmem:[%s928_s1] sm:$0xff]   ;;  %s932_s16 = smov (!%p162_p3, %s651_s16), 47  ;;  %vm228_vm0 = vcmask 130048   ;;  %v793_v11 = vld [vmem:[%s928_s1 + $0x38] sm:$0xff]   ;;  %v794_v14 = vld [vmem:[%s928_s1 + $0x30] sm:$0xff]   ;;  %vm809_vm1 = vmmov 0  }
   0xc   : > { %709 = vmatprep.subr.bf16.mxu1 %v791_v0  ;;  %v792_v1 = vld [vmem:[%s928_s1 + $0x40] sm:$0xff]   ;;  %s652_s19 = sshll.u32 %s932_s16, 3  ;;  %v795_v19 = vld [vmem:[%s928_s1 + $0x28] sm:$0xff]   ;;  %v797_v30 = vld [vmem:[%s928_s1 + $0x18] sm:$0xff]   ;;  %s934_s13 = smov (!%p167_p4, %s837_s13), 2 }
   0xd   : > { %710 = vmatpush3.bf16.msra.mxu1 %v791_v0  ;;  %s851_s22 = scalar_lea.vmem %s927_s0, %s652_s19  ;;  %v796_v24 = vld [vmem:[%s928_s1 + $0x20] sm:$0xff]   ;;  %v798_v31 = vld [vmem:[%s928_s1 + $0x10] sm:$0xff]   ;;  %v799_v32 = vld [vmem:[%s928_s1 + $0x8] sm:$0xff]   ;;  %s653_s20 = sshll.u32 %s934_s13, 3 }
   0xe   : > { %727 = vmatprep.subr.bf16.mxu1 %v792_v1  ;;  %v172_v2 = vld [vmem:[%s851_s22] sm:$0xff]  ;;  %v173_v3 = vld [vmem:[%s851_s22 + $0x8] sm:$0xff]  ;;  %v174_v4 = vld [vmem:[%s851_s22 + $0x10] sm:$0xff]  ;;  %s170_s23 = scalar_lea.vmem %s930_s3, %s653_s20 }
   0xf   : > { %v188_v5 = vpack.c.bf16 %v173_v3, %v172_v2  ;;  %v175_v6 = vld [vmem:[%s851_s22 + $0x18] sm:$0xff]  ;;  %v176_v7 = vld [vmem:[%s851_s22 + $0x20] sm:$0xff]  ;;  %v177_v8 = vld [vmem:[%s851_s22 + $0x28] sm:$0xff] }
  0x10   : > { %v189_v9 = vpack.c.bf16 %v175_v6, %v174_v4  ;;  %v190_v10 = vpack.c.bf16 %v177_v8, %v176_v7  ;;  %v178_v12 = vld [vmem:[%s851_s22 + $0x30] sm:$0xff]  ;;  %v179_v13 = vld [vmem:[%s851_s22 + $0x38] sm:$0xff]  ;;  %v180_v15 = vld [vmem:[%s851_s22 + $0x40] sm:$0xff] }
  0x11   : > { %711 = vmatprep.mubr.msk.bf16.mxu1 %vm228_vm0, %v188_v5  ;;  %v181_v16 = vld [vmem:[%s851_s22 + $0x48] sm:$0xff]  ;;  %v191_v17 = vpack.c.bf16 %v179_v13, %v178_v12  ;;  %v182_v20 = vld [vmem:[%s851_s22 + $0x50] sm:$0xff]  ;;  %v183_v21 = vld [vmem:[%s851_s22 + $0x58] sm:$0xff] }
  0x12   : > { %712 = vmatmul.mubr.msk.bf16.vlgmr.msra.gmra.mxu1 %vm228_vm0, %v189_v9  ;;  %v192_v18 = vpack.c.bf16 %v181_v16, %v180_v15  ;;  %v184_v22 = vld [vmem:[%s851_s22 + $0x60] sm:$0xff]  ;;  %v185_v23 = vld [vmem:[%s851_s22 + $0x68] sm:$0xff]  ;;  %v193_v25 = vpack.c.bf16 %v183_v21, %v182_v20  ;;  %v186_v27 = vld [vmem:[%s851_s22 + $0x70] sm:$0xff] }
  0x13   : > { %715 = vmatprep.mubr.msk.bf16.mxu1 %vm228_vm0, %v190_v10  ;;  %728 = vmatpush3.bf16.msra.mxu1 %v792_v1  ;;  %v194_v26 = vpack.c.bf16 %v185_v23, %v184_v22  ;;  %v187_v28 = vld [vmem:[%s851_s22 + $0x78] sm:$0xff]  ;;  %v654_v35 = vld [vmem:[%s929_s2] ss:$0 sm:$0xff] }
  0x14   : > { %729 = vmatprep.subr.bf16.mxu1 %v793_v11  ;;  %v195_v29 = vpack.c.bf16 %v187_v28, %v186_v27  ;;  %v217_v27 = vld [vmem:[%s929_s2 + $0x8] sm:$0xff]  ;;  %v810_v28 = vmov 0  }
  0x15   : > { %790 = vset.pattern.permute.xlu0 %v810_v28 }
  0x16   : > { %549 = vperm.xlu0 %790, %v217_v27  }
  0x17   : > { %730 = vmatpush3.bf16.msra.mxu1 %v793_v11 }
  0x18   : > { %731 = vmatprep.subr.bf16.mxu1 %v794_v14 }
  0x1a   : > { %716 = vmatmul.mubr.msk.bf16.gmra.mxu1 %vm228_vm0, %v191_v17 }
  0x1b   : > { %719 = vmatprep.mubr.msk.bf16.mxu1 %vm228_vm0, %v192_v18  ;;  %732 = vmatpush3.bf16.msra.mxu1 %v794_v14 }
  0x1c   : > { %733 = vmatprep.subr.bf16.mxu1 %v795_v19 }
  0x1f   : > { %734 = vmatpush3.bf16.msra.mxu1 %v795_v19 }
  0x20   : > { %735 = vmatprep.subr.bf16.mxu1 %v796_v24 }
  0x22   : > { %720 = vmatmul.mubr.msk.bf16.gmra.mxu1 %vm228_vm0, %v193_v25 }
  0x23   : > { %723 = vmatprep.mubr.msk.bf16.mxu1 %vm228_vm0, %v194_v26  ;;  %736 = vmatpush3.bf16.msra.mxu1 %v796_v24  ;;  %v808_v26 = vmov 0.0  }
  0x24   : > { %737 = vmatprep.subr.bf16.mxu1 %v797_v30  ;;  %759 = vmatprep.subr.bf16.mxu0 %v808_v26 }
  0x25   : > { %775 = vmatprep.mubr.msk.bf16.mxu0 %vm809_vm1, %v808_v26 }
  0x27   : > { %738 = vmatpush3.bf16.msra.mxu1 %v797_v30  ;;  %v664_v30 = vld [vmem:[%s929_s2 + $0x1] ss:$0 sm:$0xff] }
  0x28   : > { %739 = vmatprep.subr.bf16.mxu1 %v798_v31 }
  0x2a   : > { %724 = vmatmul.mubr.msk.bf16.gmra.mxu1 %vm228_vm0, %v195_v29 }
  0x2b   : > { %740 = vmatpush3.bf16.msra.mxu1 %v798_v31 }
  0x2c   : > { %741 = vmatprep.subr.bf16.mxu1 %v799_v32 }
  0x2f   : > { %742 = vmatpush3.bf16.msra.mxu1 %v799_v32 }
  0xd2   : > { %v713_v33 = vpop.f32.mrf.mxu1 }
  0xd3   : > { %v296_v39 = vadd.f32 %v713_v33, %v654_v35 }
  0xd4   : > { %v287_v34 = vpop.f32.mrf.mxu1 }
  0xd5   : > { %v288_v37 = vadd.f32 %v654_v35, %v287_v34  ;;  %v352_v46 = vmax.f32 %v296_v39, 0.0 }
  0xd6   : > { %v714_v36 = vpop.f32.mrf.mxu1 }
  0xd7   : > { %v299_v38 = vadd.f32 %v714_v36, %v654_v35  ;;  %v350_v44 = vmax.f32 %v288_v37, 0.0 }
  0xd8   : > { %v290_v40 = vpop.f32.mrf.mxu1 }
  0xd9   : > { %v291_v41 = vadd.f32 %v654_v35, %v290_v40  ;;  %v353_v42 = vmax.f32 %v299_v38, 0.0 }
  0xda   : > { %v717_v43 = vpop.f32.mrf.mxu1 }
  0xdb   : > { %v351_v45 = vmax.f32 %v291_v41, 0.0  ;;  %v367_v49 = vpack.c.bf16 %v353_v42, %v352_v46  ;;  %v312_v53 = vadd.f32 %v717_v43, %v654_v35 }
  0xdc   : > { %v303_v47 = vpop.f32.mrf.mxu1 }
  0xdd   : > { %v366_v48 = vpack.c.bf16 %v351_v45, %v350_v44  ;;  %v304_v51 = vadd.f32 %v654_v35, %v303_v47  ;;  %v356_v60 = vmax.f32 %v312_v53, 0.0 }
  0xde   : > { %v718_v50 = vpop.f32.mrf.mxu1 }
  0xdf   : > { %v315_v52 = vadd.f32 %v718_v50, %v654_v35  ;;  %743 = vmatprep.mubr.bf16.mxu1 %v366_v48  ;;  %v354_v58 = vmax.f32 %v304_v51, 0.0 }
  0xe0   : > { %v306_v54 = vpop.f32.mrf.mxu1  ;;  %744 = vmatmul.mubr.bf16.vlgmr.msra.gmra.mxu1 %v367_v49 }
  0xe1   : > { %v307_v55 = vadd.f32 %v654_v35, %v306_v54  ;;  %v357_v56 = vmax.f32 %v315_v52, 0.0 }
  0xe2   : > { %v721_v57 = vpop.f32.mrf.mxu1 }
  0xe3   : > { %v355_v59 = vmax.f32 %v307_v55, 0.0  ;;  %v369_v63 = vpack.c.bf16 %v357_v56, %v356_v60  ;;  %v328_v3 = vadd.f32 %v721_v57, %v654_v35 }
  0xe4   : > { %v319_v61 = vpop.f32.mrf.mxu1 }
  0xe5   : > { %v368_v62 = vpack.c.bf16 %v355_v59, %v354_v58  ;;  %v320_v1 = vadd.f32 %v654_v35, %v319_v61  ;;  %v360_v10 = vmax.f32 %v328_v3, 0.0 }
  0xe6   : > { %v722_v0 = vpop.f32.mrf.mxu1 }
  0xe7   : > { %v331_v2 = vadd.f32 %v722_v0, %v654_v35  ;;  %747 = vmatprep.mubr.bf16.mxu1 %v368_v62  ;;  %v358_v8 = vmax.f32 %v320_v1, 0.0 }
  0xe8   : > { %v322_v4 = vpop.f32.mrf.mxu1  ;;  %748 = vmatmul.mubr.bf16.gmra.mxu1 %v369_v63 }
  0xe9   : > { %v323_v5 = vadd.f32 %v654_v35, %v322_v4  ;;  %v361_v6 = vmax.f32 %v331_v2, 0.0 }
  0xea   : > { %v725_v7 = vpop.f32.mrf.mxu1 }
  0xeb   : > { %v359_v9 = vmax.f32 %v323_v5, 0.0  ;;  %v371_v13 = vpack.c.bf16 %v361_v6, %v360_v10  ;;  %v344_v17 = vadd.f32 %v725_v7, %v654_v35 }
  0xec   : > { %v335_v11 = vpop.f32.mrf.mxu1 }
  0xed   : > { %v370_v12 = vpack.c.bf16 %v359_v9, %v358_v8  ;;  %v336_v15 = vadd.f32 %v654_v35, %v335_v11  ;;  %v364_v23 = vmax.f32 %v344_v17, 0.0 }
  0xee   : > { %v726_v14 = vpop.f32.mrf.mxu1 }
  0xef   : > { %v347_v16 = vadd.f32 %v726_v14, %v654_v35  ;;  %751 = vmatprep.mubr.bf16.mxu1 %v370_v12  ;;  %v362_v21 = vmax.f32 %v336_v15, 0.0 }
  0xf0   : > { %v338_v18 = vpop.f32.mrf.mxu1  ;;  %752 = vmatmul.mubr.bf16.gmra.mxu1 %v371_v13 }
  0xf1   : > { %v339_v19 = vadd.f32 %v654_v35, %v338_v18  ;;  %v365_v20 = vmax.f32 %v347_v16, 0.0 }
  0xf3   : > { %v363_v22 = vmax.f32 %v339_v19, 0.0  ;;  %v373_v25 = vpack.c.bf16 %v365_v20, %v364_v23  ;;  %v550_v23 = vpop.permute.xlu0 %549 }
  0xf5   : > { %v372_v24 = vpack.c.bf16 %v363_v22, %v362_v21  ;;  %v214_v22 = vld [vmem:[%s928_s1 + $0x48] sm:$0xf] }
  0xf7   : > { %755 = vmatprep.mubr.bf16.mxu1 %v372_v24 }
  0xf8   : > { %756 = vmatmul.mubr.bf16.gmra.mxu1 %v373_v25 }
 0x1a0   : > { %v745_v29 = vpop.f32.mrf.mxu1 }
 0x1a1   : > { %v469_v32 = vadd.f32 %v745_v29, %v664_v30 }
 0x1a2   : > { %v460_v31 = vpop.f32.mrf.mxu1 }
 0x1a3   : > { %v461_v34 = vadd.f32 %v664_v30, %v460_v31  ;;  %v525_v37 = vmax.f32 %v469_v32, 0.0 }
 0x1a4   : > { %v746_v33 = vpop.f32.mrf.mxu1 }
 0x1a5   : > { %v472_v35 = vadd.f32 %v746_v33, %v664_v30  ;;  %v523_v41 = vmax.f32 %v461_v34, 0.0 }
 0x1a6   : > { %v463_v36 = vpop.f32.mrf.mxu1 }
 0x1a7   : > { %v526_v38 = vmax.f32 %v472_v35, 0.0  ;;  %v464_v39 = vadd.f32 %v664_v30, %v463_v36 }
 0x1a8   : > { %v749_v40 = vpop.f32.mrf.mxu1 }
 0x1a9   : > { %v540_v42 = vpack.c.bf16 %v526_v38, %v525_v37  ;;  %v524_v43 = vmax.f32 %v464_v39, 0.0  ;;  %v485_v13 = vadd.f32 %v749_v40, %v664_v30 }
 0x1aa   : > { %v476_v44 = vpop.f32.mrf.mxu1 }
 0x1ab   : > { %v539_v45 = vpack.c.bf16 %v524_v43, %v523_v41  ;;  %v529_v15 = vmax.f32 %v485_v13, 0.0  ;;  %v477_v18 = vadd.f32 %v664_v30, %v476_v44 }
 0x1ac   : > { %v750_v46 = vpop.f32.mrf.mxu1 }
 0x1ad   : > { %v488_v11 = vadd.f32 %v750_v46, %v664_v30  ;;  %v527_v20 = vmax.f32 %v477_v18, 0.0 }
 0x1ae   : > { %v479_v47 = vpop.f32.mrf.mxu1 }
 0x1af   : > { %v530_v14 = vmax.f32 %v488_v11, 0.0  ;;  %v480_v17 = vadd.f32 %v664_v30, %v479_v47 }
 0x1b0   : > { %v753_v48 = vpop.f32.mrf.mxu1 }
 0x1b1   : > { %v501_v3 = vadd.f32 %v753_v48, %v664_v30  ;;  %v542_v16 = vpack.c.bf16 %v530_v14, %v529_v15  ;;  %v528_v19 = vmax.f32 %v480_v17, 0.0 }
 0x1b2   : > { %v492_v49 = vpop.f32.mrf.mxu1 }
 0x1b3   : > { %v533_v5 = vmax.f32 %v501_v3, 0.0  ;;  %v493_v8 = vadd.f32 %v664_v30, %v492_v49  ;;  %v541_v21 = vpack.c.bf16 %v528_v19, %v527_v20 }
 0x1b4   : > { %v754_v50 = vpop.f32.mrf.mxu1 }
 0x1b5   : > { %v504_v1 = vadd.f32 %v754_v50, %v664_v30  ;;  %v531_v10 = vmax.f32 %v493_v8, 0.0 }
 0x1b6   : > { %v495_v51 = vpop.f32.mrf.mxu1 }
 0x1b7   : > { %v534_v4 = vmax.f32 %v504_v1, 0.0  ;;  %v496_v7 = vadd.f32 %v664_v30, %v495_v51 }
 0x1b8   : > { %v757_v52 = vpop.f32.mrf.mxu1 }
 0x1b9   : > { %v517_v54 = vadd.f32 %v757_v52, %v664_v30  ;;  %v544_v6 = vpack.c.bf16 %v534_v4, %v533_v5  ;;  %v532_v9 = vmax.f32 %v496_v7, 0.0 }
 0x1ba   : > { %v508_v53 = vpop.f32.mrf.mxu1 }
 0x1bb   : > { %v537_v58 = vmax.f32 %v517_v54, 0.0  ;;  %v509_v62 = vadd.f32 %v664_v30, %v508_v53  ;;  %v543_v12 = vpack.c.bf16 %v532_v9, %v531_v10 }
 0x1bc   : > { %v758_v55 = vpop.f32.mrf.mxu1 }
 0x1bd   : > { %v520_v56 = vadd.f32 %v758_v55, %v664_v30  ;;  %v535_v0 = vmax.f32 %v509_v62, 0.0 }
 0x1be   : > { %v511_v57 = vpop.f32.mrf.mxu1 }
 0x1bf   : > { %v538_v59 = vmax.f32 %v520_v56, 0.0  ;;  %v512_v60 = vadd.f32 %v664_v30, %v511_v57 }
 0x1c1   : > { %v546_v61 = vpack.c.bf16 %v538_v59, %v537_v58  ;;  %v536_v63 = vmax.f32 %v512_v60, 0.0 }
 0x1c3   : > { %760 = vmatpush3.bf16.xpose.msra.mxu0 %v546_v61  ;;  %v545_v2 = vpack.c.bf16 %v536_v63, %v535_v0 }
 0x1c4   : > { %761 = vmatprep.subr.bf16.mxu0 %v808_v26 }
 0x1cb   : > { %762 = vmatpush3.bf16.xpose.msra.mxu0 %v545_v2 }
 0x1cc   : > { %763 = vmatprep.subr.bf16.mxu0 %v808_v26 }
 0x1d3   : > { %764 = vmatpush3.bf16.xpose.msra.mxu0 %v544_v6 }
 0x1d4   : > { %765 = vmatprep.subr.bf16.mxu0 %v808_v26 }
 0x1db   : > { %766 = vmatpush3.bf16.xpose.msra.mxu0 %v543_v12 }
 0x1dc   : > { %767 = vmatprep.subr.bf16.mxu0 %v808_v26 }
 0x1e3   : > { %768 = vmatpush3.bf16.xpose.msra.mxu0 %v542_v16 }
 0x1e4   : > { %769 = vmatprep.subr.bf16.mxu0 %v808_v26 }
 0x1eb   : > { %770 = vmatpush3.bf16.xpose.msra.mxu0 %v541_v21 }
 0x1ec   : > { %771 = vmatprep.subr.bf16.mxu0 %v808_v26 }
 0x1f3   : > { %772 = vmatpush3.bf16.xpose.msra.mxu0 %v540_v42 }
 0x1f4   : > { %773 = vmatprep.subr.bf16.mxu0 %v808_v26 }
 0x1fb   : > { %774 = vmatpush3.bf16.xpose.msra.mxu0 %v539_v45 }
 0x202   : > { %776 = vmatmul.mubr.bf16.vlgmr.msra.gmra.mxu0 %v214_v22 }
 0x2c2   : > { %v586_v24 = vpop.f32.mrf.mxu0 }
 0x2c3   : > { %v587_v25 = vadd.f32 %v586_v24, %v550_v23 }
 0x2c4   : > { %v777_v27 = vpop.f32.mrf.mxu0 }
 0x2c5   : > { %592 = vst [vmem:[%s170_s23] sm:$0xff] %v587_v25 }
 0x2c6   : > { %v589_v28 = vpop.f32.mrf.mxu0 }
 0x2c8   : > { %v778_v26 = vpop.f32.mrf.mxu0 }
 0x2c9 PF: > { %s13_s12 = sadd.s32 1, %s806_s12  }
 0x2ca   : > { %p10_p5 = scmp.ge.s32.totalorder %s13_s12, 5  }
 0x2cc   :  { %12 = sbr.rel (!%p10_p5) target bundleno = 1 (0x1), region = 62 }

</bundles_post_ra>
